<compile_context>
chip_gen: v7x
topology: tpu7x:2x2x1
jax: 0.10.0
libtpu: 0.0.40
codegen_flags: <defaults>
</compile_context>

<pallas_src>
import jax
import jax.numpy as jnp
from jax.experimental import pallas as pl
from jax.experimental.pallas import tpu as pltpu


def _soft_xent_kernel(x_ref, t_ref, part_ref):
    # x_ref / t_ref: (1, C, TILE_N) blocks.
    # part_ref: (1, 1, TILE_N) per-batch partial-sum accumulator, resident in
    # VMEM across the spatial-tile (reduction) grid axis.
    j = pl.program_id(1)

    @pl.when(j == 0)
    def _init():
        part_ref[...] = jnp.zeros_like(part_ref)

    x = x_ref[0].astype(jnp.float32)          # (C, TILE_N) logits
    t = t_ref[0].astype(jnp.float32)          # (C, TILE_N) soft targets

    # Numerically stable -log_softmax over the channel (sublane) axis.
    m = jnp.max(x, axis=0, keepdims=True)                        # (1, TILE_N)
    z = x - m
    lse = jnp.log(jnp.sum(jnp.exp(z), axis=0, keepdims=True))    # (1, TILE_N)
    nls = lse - z                                                # -log_softmax(x)

    # Channel (sublane) reduce -> lane-dense partial; VPU accumulate into the
    # resident output block.  Cross-lane collapse happens only in the wrapper.
    part_ref[...] += jnp.sum(nls * t, axis=0, keepdims=True)[None]


def _round_up(x, m):
    return (x + m - 1) // m * m


def soft_cross_entropy_loss_2d(inputs, targets):
    """Forward pass of SoftCrossEntropyLoss2d. Returns a (1, 1, 1, 1) array."""
    b, c, h, w = inputs.shape
    n = h * w

    x = inputs.reshape(b, c, n)
    t = targets.reshape(b, c, n)

    # Lane-dense spatial tiling: last dim a multiple of 128; aim for ~1 MiB
    # per (C, TILE_N) f32 input block (double-buffered x 2 inputs still sits
    # comfortably under the default scoped-VMEM limit).
    lanes = 128
    budget_cols = max(lanes, ((1 << 20) // (4 * c)) // lanes * lanes)
    tile_n = min(budget_cols, 4096, _round_up(n, lanes))
    n_pad = _round_up(n, tile_n)
    if n_pad != n:
        # Zero-padded pixels contribute exactly 0 (their soft targets are 0).
        pad = ((0, 0), (0, 0), (0, n_pad - n))
        x = jnp.pad(x, pad)
        t = jnp.pad(t, pad)

    grid = (b, n_pad // tile_n)

    cost = pl.CostEstimate(
        flops=8 * b * c * n_pad,
        transcendentals=b * (c + 1) * n_pad,
        bytes_accessed=2 * b * c * n_pad * 4 + b * tile_n * 4,
    )

    partials = pl.pallas_call(
        _soft_xent_kernel,
        out_shape=jax.ShapeDtypeStruct((b, 1, tile_n), jnp.float32),
        grid=grid,
        in_specs=[
            pl.BlockSpec((1, c, tile_n), lambda i, j: (i, 0, j)),
            pl.BlockSpec((1, c, tile_n), lambda i, j: (i, 0, j)),
        ],
        out_specs=pl.BlockSpec((1, 1, tile_n), lambda i, j: (i, 0, 0)),
        compiler_params=pltpu.CompilerParams(
            # Batch axis is fully independent (per-batch output block) ->
            # parallel for megacore; spatial-tile axis is the reduction.
            dimension_semantics=("parallel", "arbitrary")),
        cost_estimate=cost,
    )(x, t)

    # Tiny (B, 1, TILE_N) -> scalar reduce + 1/(H*W) scaling outside the kernel.
    total = jnp.sum(partials)
    # The full-size conv2d in the reference produces a (1, 1, 1, 1) tensor.
    return (total / jnp.float32(n)).reshape(1, 1, 1, 1)


def _reference(inputs, targets):
    """Pure-JAX reference mirroring the PyTorch forward."""
    _, _, h, w = inputs.shape
    nls = -jax.nn.log_softmax(inputs.astype(jnp.float32), axis=1)
    per_image = jnp.sum(nls * targets.astype(jnp.float32), axis=(1, 2, 3)) / (h * w)
    return jnp.sum(per_image)


if __name__ == "__main__":
    key = jax.random.PRNGKey(0)
    k_in, k_tgt = jax.random.split(key)

    b, c, h, w = 2, 4, 16, 16
    inputs = jax.random.normal(k_in, (b, c, h, w), dtype=jnp.float32)
    # Soft targets: per-pixel probability distribution over the C channels.
    targets = jax.nn.softmax(
        jax.random.normal(k_tgt, (b, c, h, w), dtype=jnp.float32), axis=1)

    out = soft_cross_entropy_loss_2d(inputs, targets)
    out = jax.block_until_ready(out)

    ref = _reference(inputs, targets)
    ref = jax.block_until_ready(ref)

    assert out.shape == (1, 1, 1, 1), out.shape
    assert jnp.allclose(out.reshape(()), ref, rtol=1e-5, atol=1e-5), (out, ref)
    print("KERNEL_OK")
</pallas_src>

<mosaic_0001>
module attributes {stable_mosaic.version = 11 : i64} {
  func.func @_soft_xent_kernel(%arg0: i32, %arg1: i32, %arg2: memref<1x4x256xf32, #tpu.memory_space<vmem>>, %arg3: memref<1x4x256xf32, #tpu.memory_space<vmem>>, %arg4: memref<1x1x256xf32, #tpu.memory_space<vmem>>) attributes {dimension_semantics = [#tpu.dimension_semantics<parallel>, #tpu.dimension_semantics<arbitrary>], iteration_bounds = array<i64: 2, 1>, scalar_prefetch = 0 : i64, scratch_operands = 0 : i64, tpu.core_type = #tpu.core_type<tc>, window_params = [{transform_indices = @transform_0, window_bounds = array<i64: 1, 4, 256>}, {transform_indices = @transform_1, window_bounds = array<i64: 1, 4, 256>}, {transform_indices = @transform_2, window_bounds = array<i64: 1, 1, 256>}]} {
    %c0_i32 = arith.constant 0 : i32
    %0 = arith.cmpi eq, %arg1, %c0_i32 : i32
    %1 = arith.extui %0 : i1 to i32
    %c0_i32_0 = arith.constant 0 : i32
    %2 = arith.cmpi ne, %1, %c0_i32_0 : i32
    scf.if %2 {
      %cst_14 = arith.constant 0.000000e+00 : f32
      %24 = vector.broadcast %cst_14 : f32 to vector<1x1x256xf32>
      %c0_15 = arith.constant 0 : index
      %c0_16 = arith.constant 0 : index
      %c0_17 = arith.constant 0 : index
      %25 = vector.load %arg4[%c0_15, %c0_16, %c0_17] : memref<1x1x256xf32, #tpu.memory_space<vmem>>, vector<1x1x256xf32>
      tpu.vector_store %arg4[%c0_15, %c0_16, %c0_17], %24 {strides = array<i32>} : memref<1x1x256xf32, #tpu.memory_space<vmem>>, vector<1x1x256xf32>,
    } else {
    }
    %c0 = arith.constant 0 : index
    %c0_1 = arith.constant 0 : index
    %c0_2 = arith.constant 0 : index
    %3 = vector.load %arg2[%c0, %c0_1, %c0_2] : memref<1x4x256xf32, #tpu.memory_space<vmem>>, vector<1x4x256xf32>
    %4 = vector.shape_cast %3 : vector<1x4x256xf32> to vector<4x256xf32>
    %c0_3 = arith.constant 0 : index
    %c0_4 = arith.constant 0 : index
    %c0_5 = arith.constant 0 : index
    %5 = vector.load %arg3[%c0_3, %c0_4, %c0_5] : memref<1x4x256xf32, #tpu.memory_space<vmem>>, vector<1x4x256xf32>
    %6 = vector.shape_cast %5 : vector<1x4x256xf32> to vector<4x256xf32>
    %cst = arith.constant dense<0xFF800000> : vector<256xf32>
    %7 = vector.multi_reduction <maximumf>, %4, %cst [0] : vector<4x256xf32> to vector<256xf32>
    %8 = vector.shape_cast %7 : vector<256xf32> to vector<1x256xf32>
    %9 = vector.broadcast %8 : vector<1x256xf32> to vector<4x256xf32>
    %10 = arith.subf %4, %9 : vector<4x256xf32>
    %11 = math.exp %10 : vector<4x256xf32>
    %cst_6 = arith.constant dense<0.000000e+00> : vector<256xf32>
    %12 = vector.multi_reduction <add>, %11, %cst_6 [0] : vector<4x256xf32> to vector<256xf32>
    %13 = vector.shape_cast %12 : vector<256xf32> to vector<1x256xf32>
    %14 = math.log %13 : vector<1x256xf32>
    %15 = vector.broadcast %14 : vector<1x256xf32> to vector<4x256xf32>
    %16 = arith.subf %15, %10 : vector<4x256xf32>
    %c0_7 = arith.constant 0 : index
    %c0_8 = arith.constant 0 : index
    %c0_9 = arith.constant 0 : index
    %17 = vector.load %arg4[%c0_7, %c0_8, %c0_9] : memref<1x1x256xf32, #tpu.memory_space<vmem>>, vector<1x1x256xf32>
    %18 = arith.mulf %16, %6 : vector<4x256xf32>
    %cst_10 = arith.constant dense<0.000000e+00> : vector<256xf32>
    %19 = vector.multi_reduction <add>, %18, %cst_10 [0] : vector<4x256xf32> to vector<256xf32>
    %20 = vector.shape_cast %19 : vector<256xf32> to vector<1x256xf32>
    %21 = vector.shape_cast %20 : vector<1x256xf32> to vector<1x1x256xf32>
    %22 = arith.addf %17, %21 : vector<1x1x256xf32>
    %c0_11 = arith.constant 0 : index
    %c0_12 = arith.constant 0 : index
    %c0_13 = arith.constant 0 : index
    %23 = vector.load %arg4[%c0_11, %c0_12, %c0_13] : memref<1x1x256xf32, #tpu.memory_space<vmem>>, vector<1x1x256xf32>
    tpu.vector_store %arg4[%c0_11, %c0_12, %c0_13], %22 {strides = array<i32>} : memref<1x1x256xf32, #tpu.memory_space<vmem>>, vector<1x1x256xf32>,
    return
  }
  func.func @transform_0(%arg0: i32, %arg1: i32) -> (i32, i32, i32) {
    %c0_i32 = arith.constant 0 : i32
    %c0_i32_0 = arith.constant 0 : i32
    return %arg0, %c0_i32, %arg1 : i32, i32, i32
  }
  func.func @transform_1(%arg0: i32, %arg1: i32) -> (i32, i32, i32) {
    %c0_i32 = arith.constant 0 : i32
    %c0_i32_0 = arith.constant 0 : i32
    return %arg0, %c0_i32, %arg1 : i32, i32, i32
  }
  func.func @transform_2(%arg0: i32, %arg1: i32) -> (i32, i32, i32) {
    %c0_i32 = arith.constant 0 : i32
    %c0_i32_0 = arith.constant 0 : i32
    %c0_i32_1 = arith.constant 0 : i32
    return %arg0, %c0_i32, %c0_i32_0 : i32, i32, i32
  }
}

</mosaic_0001>

<bundles_post_ra>
// kernel: tpu_custom_call.1
= control target key start
LH: loop header
LB: loop body
LE: loop exit
PB: predicated region body
PF: predicated region fallthrough
CT: control target
= control target key end

     0   :  { %7 = vsyncpa [#allocation3], 0  ;;  %s961_s0 = inlined_call_operand.hbm [shape: f32[2,4,256], index: 0, kind: input, shape index: {}]   ;;  %s962_s1 = inlined_call_operand.hbm [shape: f32[2,4,256], index: 1, kind: input, shape index: {}]   ;;  %s963_s2 = inlined_call_operand.hbm [shape: f32[2,1,256], index: 2, kind: output, shape index: {}]  }
   0x1   :  { %9 = vsyncpa [#allocation3 + $0x1], 0 }
   0x2   :  { %10 = vsyncpa [#allocation6], 0 }
   0x3   :  { %12 = vsyncpa [#allocation6 + $0x1], 0 }
   0x4   :  { %13 = vsyncpa [#allocation4], 0 }
   0x5   :  { %15 = vsyncpa [#allocation4 + $0x1], 0  ;;  %s715_s9 = smov 0   ;;  %s717_s10 = smov 0  }
   0x6   :  { %s719_s11 = smov 0   ;;  %s721_s12 = smov 0  }
   0x7   :  { %s723_s13 = smov 0   ;;  %s725_s14 = smov 0  }
   0x8 LB: > { %s448_s15 = sadd.s32 4294967295, %s693_s14   ;;  %s449_s16 = sadd.s32 4294967294, %s693_s14   ;;  %s693_s14 = sphi %s725_s14, %s21_s14   ;;  %s689_s13 = sphi %s723_s13, %s985_s13   ;;  %s685_s12 = sphi %s721_s12, %s984_s12   ;;  %s681_s11 = sphi %s719_s11, %s983_s11   ;;  %s677_s10 = sphi %s717_s10, %s982_s10   ;;  %s673_s9 = sphi %s715_s9, %s981_s9  }
   0x9   : > { %s33_s17 = sadd.s32 1, %s689_s13  ;;  %s42_s18 = sadd.s32 1, %s681_s11 }
   0xa   : > { %p35_p0 = scmp.ge.s32.totalorder %s33_s17, 2  ;;  %p49_p1 = scmp.ne.s32.totalorder %s681_s11, %s677_s10 }
   0xb   : > { %p50_p2 = scmp.eq.s32.totalorder %s693_s14, 0  ;;  %p55_p3 = scmp.ne.s32.totalorder %s677_s10, %s673_s9 }
   0xc   : > { %s987_s17 = smov (%p35_p0, %s33_s17), 0  ;;  %p56_p5 = scmp.eq.s32.totalorder %s448_s15, 0 }
   0xd   : > { %p756_p4 = por %p50_p2, %p49_p1  ;;  %s37_s20 = ssub.s32 %s689_s13, %s987_s17 }
   0xe   : > { %p107_p6 = scmp.eq.s32.totalorder %s448_s15, 1  ;;  %p40_p7 = scmp.eq.s32.totalorder %s37_s20, 0 }
   0xf   : > { %p762_p8 = por %p56_p5, %p55_p3  ;;  %p113_p10 = scmp.eq.s32.totalorder %s449_s16, 1 }
  0x10   : > { %p766_p9 = por %p107_p6, %p49_p1  ;;  %p487_p13 = scmp.lt.s32.totalorder %s693_s14, 2 }
  0x11   : > { %s967_s21 = scalar_select %p762_p8, 1, 0 }
  0x12   : > { %s968_s22 = scalar_select %p766_p9, 1, 0 }
  0x13   : > { %s771_s23 = scalar_select %p40_p7, %s681_s11, %s42_s18  }
  0x14   : > { %p773_p11 = por %p113_p10, %p55_p3  ;;  %s780_s25 = sand.u32 1, %s681_s11  }
  0x15   : > { %s452_s26 = sshll.u32 %s780_s25, 3  ;;  %s467_s27 = sshll.u32 %s689_s13, 7 }
  0x16   : > { %s969_s24 = scalar_select %p773_p11, 1, 0 }
  0x17   : > { %s789_s30 = scalar_lea.hbm %s961_s0, %s467_s27  ;;  %s137_s3 = scalar_lea.vmem [#allocation2], %s452_s26 }
  0x18   : > { %s147_s4 = sshll.u32 %s137_s3, 4  ;;  %p797_p0 = pnand %p487_p13, %p756_p4  ;;  %s793_s4 = int_to_ptr.vmem [resolvable:$true] %s147_s4 }
  0x19   : > { %s134_s6 = scalar_lea.sflag [#allocation3], %s780_s25  ;;  %s547_s7 = scalar_lea.hbm %s789_s30, 128 }
  0x1a   : > { %p548_p3 = scmp.ne.s32.totalorder %s789_s30, %s547_s7  ;;  %p549_p5 = pneg %p797_p0 }
  0x1b   : > { %s552_s16 = scalar_lea.hbm %s961_s0, 256  ;;  %p553_p4 = scmp.lt.u32.totalorder %s789_s30, %s961_s0 }
  0x1c   : > { %p550_p6 = pnand %p549_p5, %p548_p3  ;;  %p554_p10 = scmp.lt.u32.totalorder %s552_s16, %s547_s7 }
  0x1d   : > { %p556_p12 = scmp.lt.u32.totalorder %s547_s7, %s789_s30 }
  0x1e   : > { %p551_p7 = pneg %p550_p6  ;;  %p555_p13 = por %p554_p10, %p553_p4 }
  0x20   : > { %p557_p1 = por %p556_p12, %p555_p13 }
  0x22   : > { %p558_p2 = pnand %p557_p1, %p551_p7 }
  0x24   : > { %561 = shalt.err (!%p558_p2)
}
  0x25   : > { %s562_s20 = scalar_lea.vmem %s793_s4, 128  ;;  %s695_s28 = smov [#allocation2]  }
  0x26   : > { %p563_p3 = scmp.ne.s32.totalorder %s793_s4, %s562_s20  ;;  %s567_s29 = sshll.u32 %s695_s28, 4  ;;  %s568_s29 = int_to_ptr.vmem [resolvable:$false] %s567_s29 }
  0x27   : > { %s569_s3 = scalar_lea.vmem %s568_s29, 256  ;;  %p570_p9 = scmp.lt.s32.totalorder %s793_s4, %s568_s29 }
  0x28   : > { %p565_p6 = pnand %p563_p3, %p549_p5  ;;  %p571_p4 = scmp.lt.s32.totalorder %s569_s3, %s562_s20 }
  0x2a   : > { %p566_p11 = pneg %p565_p6  ;;  %p572_p10 = por %p571_p4, %p570_p9 }
  0x2c   : > { %p573_p12 = pnand %p572_p10, %p566_p11 }
  0x2e   : > { %576 = shalt.err (!%p573_p12)
}
  0x2f   : > { %479 = dma.hbm_to_vmem [thread:$0]  (!%p797_p0), %s789_s30, 128, %s793_s4, %s134_s6  }
  0x30   : > { %p971_p1 = scmp.lt.s32.totalorder %s693_s14, 3  ;;  %p972_p2 = scmp.ge.s32.totalorder %s693_s14, 1 }
  0x31   : > { %s842_s16 = scalar_lea.hbm %s962_s1, %s467_s27  ;;  %s158_s18 = scalar_lea.vmem [#allocation5], %s452_s26 }
  0x32   : > { %p833_p7 = pnand %p972_p2, %p971_p1  ;;  %s168_s19 = sshll.u32 %s158_s18, 4  ;;  %s169_s19 = int_to_ptr.vmem [resolvable:$true] %s168_s19 }
  0x33   : > { %s155_s30 = scalar_lea.sflag [#allocation6], %s780_s25  ;;  %s577_s4 = scalar_lea.hbm %s842_s16, 128 }
  0x34   : > { %s973_s7 = scalar_select %p833_p7, 1, 0 }
  0x35   : > { %p578_p9 = scmp.ne.s32.totalorder %s842_s16, %s577_s4  ;;  %s582_s27 = scalar_lea.hbm %s962_s1, 256 }
  0x36   : > { %p583_p3 = scmp.lt.u32.totalorder %s842_s16, %s962_s1  ;;  %p584_p6 = scmp.lt.u32.totalorder %s582_s27, %s577_s4 }
  0x37   : > { %p580_p11 = pnand %p578_p9, %p549_p5  ;;  %p586_p10 = scmp.lt.u32.totalorder %s577_s4, %s842_s16 }
  0x38   : > { %p585_p4 = por %p584_p6, %p583_p3 }
  0x39   : > { %p581_p13 = pneg %p580_p11 }
  0x3a   : > { %p587_p12 = por %p586_p10, %p585_p4 }
  0x3c   : > { %p588_p1 = pnand %p587_p12, %p581_p13 }
  0x3e   : > { %591 = shalt.err (!%p588_p1)
}
  0x3f   : > { %s592_s25 = scalar_lea.vmem %s169_s19, 128  ;;  %s696_s26 = smov [#allocation5]  }
  0x40   : > { %p593_p2 = scmp.ne.s32.totalorder %s169_s19, %s592_s25  ;;  %s597_s3 = sshll.u32 %s696_s26, 4  ;;  %s598_s3 = int_to_ptr.vmem [resolvable:$false] %s597_s3 }
  0x41   : > { %s599_s8 = scalar_lea.vmem %s598_s3, 256  ;;  %p600_p8 = scmp.lt.s32.totalorder %s169_s19, %s598_s3 }
  0x42   : > { %p595_p9 = pnand %p593_p2, %p549_p5  ;;  %p601_p7 = scmp.lt.s32.totalorder %s599_s8, %s592_s25 }
  0x44   : > { %p596_p11 = pneg %p595_p9  ;;  %p602_p3 = por %p601_p7, %p600_p8 }
  0x46   : > { %p603_p6 = pnand %p602_p3, %p596_p11 }
  0x48   : > { %606 = shalt.err (!%p603_p6)
}
  0x49   : > { %482 = dma.hbm_to_vmem [thread:$0]  (!%p797_p0), %s842_s16, 128, %s169_s19, %s155_s30  }
  0x4a   : > { %p974_p13 = scmp.ne.s32.totalorder %s973_s7, 0 }
  0x4b   : > { %s869_s15 = sand.u32 (!%p974_p13), 1, %s677_s10   ;;  %p975_p5 = scmp.ne.s32.totalorder (!%p974_p13), %s967_s21, 0 }
  0x4c   : > { %177 = sbr.rel (%p974_p13) target bundleno = 186 (0xba), region = 28  ;;  %s459_s18 = sshll.u32 (!%p974_p13), %s869_s15, 3 }
  0x4d   : > { %s180_s4 = scalar_lea.sflag (!%p974_p13), [#allocation3], %s869_s15  ;;  %s183_s6 = scalar_lea.vmem (!%p974_p13), [#allocation2], %s459_s18 }
  0x53   : > { %660 = dma.done.wait (%p975_p5), %s180_s4, 128  }
  0x54   : > { %662 = vsyncadd (%p975_p5), %s180_s4, 4294967168  ;;  %s189_s5 = scalar_lea.sflag [#allocation6], %s869_s15  ;;  %s878_s16 = scalar_lea.vmem [#allocation5], %s459_s18 }
  0x55   : > { %664 = dma.done.wait (%p975_p5), %s189_s5, 128  }
  0x56   : > { %666 = vsyncadd (%p975_p5), %s189_s5, 4294967168  ;;  %s461_s7 = sshll.u32 %s869_s15, 1  ;;  %v224_v0 = vlaneseq  ;;  %v697_v2 = vmov 0.0   ;;  %vm234_vm1 = vcmask 1043456   ;;  %v229_v3 = vld [vmem:[%s183_s6] sm:$0xff]  ;;  %v230_v39 = vld [vmem:[%s878_s16] sm:$0xff] }
  0x57   : > { %s890_s19 = scalar_lea.vmem [#allocation7], %s461_s7  ;;  %v232_v4 = vcombine.high %v229_v3, %v229_v3  ;;  %v235_v5 = vsel %vm234_vm1, %v229_v3, -inf  ;;  %v284_v45 = vcombine.high %v230_v39, %v230_v39  ;;  %v698_v56 = vmov 1966171168   ;;  %s469_s21 = sshll.u32 %s685_s12, 5 }
  0x58   : > { %vm886_vm0 = vcmp.lt.s32.totalorder %v224_v0, 256  ;;  %v236_v6 = vrot.slane %v235_v5, 4  ;;  %v306_v57 = vunpack.c.l.s4 %v698_v56  ;;  %v309_v63 = vshrl.u32 %v224_v0, 7  ;;  %s341_s30 = sshll.u32 %s890_s19, 4  ;;  %s909_s28 = scalar_lea.hbm %s963_s2, %s469_s21  ;;  %s911_s30 = int_to_ptr.vmem [resolvable:$true] %s341_s30 }
  0x59   : > { %228 = vst.msk [vmem:[%s890_s19] sm:$0x3] %vm886_vm0, %v697_v2  ;;  %v242_v7 = vsel %vm234_vm1, %v232_v4, -inf  ;;  %s327_s29 = scalar_lea.sflag [#allocation4], %s869_s15  ;;  %s607_s25 = scalar_lea.vmem %s911_s30, 32 }
  0x5a   : > { %v237_v8 = vmax.f32 %v235_v5, %v236_v6  ;;  %v243_v9 = vrot.slane %v242_v7, 4  ;;  %v307_v62 = vunpack.c.0.s8 %v306_v57  ;;  %p608_p8 = scmp.ne.s32.totalorder %s911_s30, %s607_s25  ;;  %p978_p0 = scmp.ne.s32.totalorder %s968_s22, 0 }
  0x5b   : > { %s699_s12 = smov [#allocation7]  }
  0x5c   : > { %v238_v10 = vrot.slane %v237_v8, 2  ;;  %v244_v11 = vmax.f32 %v242_v7, %v243_v9  ;;  %v310_v5 = vsub.s32 %v307_v62, %v309_v63  ;;  %p609_p7 = pnand %p608_p8, %p978_p0  ;;  %s611_s26 = sshll.u32 %s699_s12, 4  ;;  %s612_s26 = int_to_ptr.vmem [resolvable:$false] %s611_s26 }
  0x5d   : > { %s613_s3 = scalar_lea.vmem %s612_s26, 64  ;;  %p614_p10 = scmp.lt.s32.totalorder %s911_s30, %s612_s26 }
  0x5e   : > { %v239_v12 = vmax.f32 %v237_v8, %v238_v10  ;;  %v245_v13 = vrot.slane %v244_v11, 2  ;;  %p610_p4 = pneg %p609_p7  ;;  %p615_p12 = scmp.lt.s32.totalorder %s613_s3, %s607_s25 }
  0x60   : > { %v240_v14 = vrot.slane %v239_v12, 1  ;;  %v246_v15 = vmax.f32 %v244_v11, %v245_v13  ;;  %v282_v8 = vld [vmem:[%s890_s19] sm:$0x3]  ;;  %p616_p1 = por %p615_p12, %p614_p10 }
  0x62   : > { %v241_v16 = vmax.f32 %v239_v12, %v240_v14  ;;  %v247_v17 = vrot.slane %v246_v15, 1  ;;  %p617_p2 = pnand %p616_p1, %p610_p4 }
  0x64   : > { %v248_v18 = vmax.f32 %v246_v15, %v247_v17 }
  0x66   : > { %v251_v19 = vcombine.low %v241_v16, %v248_v18 }
  0x68   : > { %v253_v20 = vsub.f32 %v229_v3, %v251_v19 }
  0x6a   : > { %v254_v21 = vmul.f32 1.442695, %v253_v20  ;;  %v278_v41 = vcombine.high %v253_v20, %v253_v20 }
  0x6c   : > { %541 = vpow2.f32 %v254_v21 }
  0x76   : > { %v542_v22 = vpop.eup %541 }
  0x77   : > { %v257_v23 = vcombine.high %v542_v22, %v542_v22  ;;  %v259_v24 = vsel %vm234_vm1, %v542_v22, 0.0 }
  0x78   : > { %v260_v25 = vrot.slane %v259_v24, 4 }
  0x79   : > { %v266_v26 = vsel %vm234_vm1, %v257_v23, 0.0 }
  0x7a   : > { %v261_v27 = vadd.f32 %v260_v25, %v259_v24  ;;  %v267_v28 = vrot.slane %v266_v26, 4 }
  0x7c   : > { %v262_v29 = vrot.slane %v261_v27, 2  ;;  %v268_v30 = vadd.f32 %v267_v28, %v266_v26 }
  0x7e   : > { %v263_v31 = vadd.f32 %v262_v29, %v261_v27  ;;  %v269_v32 = vrot.slane %v268_v30, 2 }
  0x80   : > { %v264_v33 = vrot.slane %v263_v31, 1  ;;  %v270_v34 = vadd.f32 %v269_v32, %v268_v30 }
  0x82   : > { %v265_v35 = vadd.f32 %v264_v33, %v263_v31  ;;  %v271_v36 = vrot.slane %v270_v34, 1 }
  0x84   : > { %v272_v37 = vadd.f32 %v271_v36, %v270_v34  ;;  %543 = vlog2.f32 %v265_v35 }
  0x86   : > { %545 = vlog2.f32 %v272_v37 }
  0x8e   : > { %v544_v38 = vpop.eup %543 }
  0x8f   : > { %v274_v40 = vmul.f32 0.6931472, %v544_v38 }
  0x90   : > { %v546_v42 = vpop.eup %545 }
  0x91   : > { %v276_v43 = vmul.f32 0.6931472, %v546_v42  ;;  %v280_v44 = vsub.f32 %v274_v40, %v253_v20 }
  0x93   : > { %v281_v46 = vsub.f32 %v276_v43, %v278_v41  ;;  %v286_v47 = vmul.f32 %v280_v44, %v230_v39 }
  0x95   : > { %v287_v48 = vmul.f32 %v284_v45, %v281_v46  ;;  %v288_v49 = vsel %vm234_vm1, %v286_v47, 0.0 }
  0x96   : > { %v289_v50 = vrot.slane %v288_v49, 4 }
  0x97   : > { %v295_v51 = vsel %vm234_vm1, %v287_v48, 0.0 }
  0x98   : > { %v290_v52 = vadd.f32 %v289_v50, %v288_v49  ;;  %v296_v53 = vrot.slane %v295_v51, 4 }
  0x9a   : > { %v291_v54 = vrot.slane %v290_v52, 2  ;;  %v297_v55 = vadd.f32 %v296_v53, %v295_v51 }
  0x9c   : > { %v292_v58 = vadd.f32 %v291_v54, %v290_v52  ;;  %v298_v59 = vrot.slane %v297_v55, 2 }
  0x9e   : > { %v293_v60 = vrot.slane %v292_v58, 1  ;;  %v299_v61 = vadd.f32 %v298_v59, %v297_v55 }
  0xa0   : > { %v294_v2 = vadd.f32 %v293_v60, %v292_v58  ;;  %v300_v3 = vrot.slane %v299_v61, 1 }
  0xa2   : > { %v301_v4 = vadd.f32 %v300_v3, %v299_v61 }
  0xa4   : > { %v304_v6 = vcombine.low %v294_v2, %v301_v4 }
  0xa6   : > { %v311_v7 = vrot.slane %v304_v6, %v310_v5 }
  0xa8   : > { %v318_v9 = vrot.slane %v311_v7, %v310_v5 }
  0xaa   : > { %v320_v10 = vadd.f32 %v318_v9, %v282_v8 }
  0xac   : > { %325 = vst.msk [vmem:[%s890_s19] sm:$0x3] %vm886_vm0, %v320_v10 }
  0xad   : > { %620 = shalt.err (!%p617_p2)
}
  0xae   : > { %s621_s8 = scalar_lea.hbm %s909_s28, 32  ;;  %s625_s4 = scalar_lea.hbm %s963_s2, 64 }
  0xaf   : > { %p622_p9 = scmp.ne.s32.totalorder %s909_s28, %s621_s8  ;;  %p626_p6 = scmp.lt.u32.totalorder %s909_s28, %s963_s2 }
  0xb0   : > { %p627_p13 = scmp.lt.u32.totalorder %s625_s4, %s621_s8  ;;  %p629_p8 = scmp.lt.u32.totalorder %s621_s8, %s909_s28 }
  0xb1   : > { %p623_p11 = pnand %p622_p9, %p978_p0 }
  0xb2   : > { %p628_p5 = por %p627_p13, %p626_p6 }
  0xb3   : > { %p624_p3 = pneg %p623_p11 }
  0xb4   : > { %p630_p7 = por %p629_p8, %p628_p5 }
  0xb6   : > { %p631_p4 = pnand %p630_p7, %p624_p3 }
  0xb8   : > { %634 = shalt.err (!%p631_p4)
}
  0xb9   : > { %474 = dma.vmem_to_hbm [thread:$0]  (%p978_p0), %s911_s30, 32, %s909_s28, %s327_s29  }
  0xba PF: > { %s353_s16 = sand.u32 1, %s673_s9   ;;  %p979_p10 = scmp.ne.s32.totalorder %s969_s24, 0 }
  0xbb   : > { %p980_p12 = scmp.ge.s32.totalorder %s693_s14, 2  ;;  %s354_s7 = scalar_lea.sflag [#allocation4], %s353_s16 }
  0xbd   : > { %p484_p1 = pnand %p980_p12, %p979_p10 }
  0xbf   : > { %668 = dma.done.wait (!%p484_p1), %s354_s7, 32  }
  0xc0   : > { %670 = vsyncadd (!%p484_p1), %s354_s7, 4294967264  ;;  %s21_s14 = sadd.s32 1, %s693_s14   ;;  %s981_s9 = smov %s677_s10 }
  0xc1   : > { %p18_p2 = scmp.ge.s32.totalorder %s21_s14, 4   ;;  %s982_s10 = smov %s681_s11 }
  0xc2   : > { %s983_s11 = smov %s771_s23  ;;  %s984_s12 = smov %s689_s13 }
  0xc3   : > { %s985_s13 = smov %s987_s17  ;;  %20 = sbr.rel (!%p18_p2) target bundleno = 8 (0x8), region = 90 }
  0xca   :  { %359 = vsyncpa [#allocation3], 1 }
  0xcb   :  { %361 = vsyncpa [#allocation3 + $0x1], 1 }
  0xcc   :  { %362 = vsyncpa [#allocation6], 1 }
  0xcd   :  { %364 = vsyncpa [#allocation6 + $0x1], 1 }
  0xce   :  { %365 = vsyncpa [#allocation4], 1 }
  0xcf   :  { %367 = vsyncpa [#allocation4 + $0x1], 1 }

</bundles_post_ra>
